<compile_context>
chip_gen: v7x
topology: tpu7x:2x2x1
jax: 0.10.0
libtpu: 0.0.40
codegen_flags: <defaults>
</compile_context>

<pallas_src>
import jax
import jax.numpy as jnp
from jax.experimental import pallas as pl
from jax.experimental.pallas import tpu as pltpu

F_PAD = 128          # padded width for n_state / hidden / latent
F2_PAD = 2 * F_PAD   # fused [mu | logsigma] width, and the packed [x | eps] width


def _round_up(n, m):
    return ((n + m - 1) // m) * m


def _vae_kernel(xe_ref, w1_ref, b1_ref, w23_ref, b23_ref,
                wd1_ref, bd1_ref, wd2_ref, bd2_ref,
                xhat_ref, kl_ref):
    # Packed input slab: lanes [0,128) = padded x, lanes [128,256) = padded eps.
    x = xe_ref[:, :F_PAD]
    eps = xe_ref[:, F_PAD:]

    # ----- encoder -----
    h = jnp.dot(x, w1_ref[...], preferred_element_type=jnp.float32) + b1_ref[...]
    h = jnp.maximum(h, 0.0)

    ms = jnp.dot(h, w23_ref[...], preferred_element_type=jnp.float32) + b23_ref[...]
    mu = ms[:, :F_PAD]
    logsigma = ms[:, F_PAD:]
    sigma = jnp.exp(logsigma)
    z = mu + sigma * eps

    # kl = sum(log q(z;mu,sigma) - log p(z;0,1), -1)
    #    = sum(-logsigma - 0.5*eps^2 + 0.5*z^2, -1)   [since z - mu = sigma*eps]
    # Padded lanes: logsigma=0, eps=0, z=0  ->  contribution exactly 0.
    kl = jnp.sum(-logsigma - 0.5 * eps * eps + 0.5 * z * z,
                 axis=-1, keepdims=True)

    # ----- decoder -----
    hd = jnp.dot(z, wd1_ref[...], preferred_element_type=jnp.float32) + bd1_ref[...]
    hd = jnp.maximum(hd, 0.0)
    x_hat = jnp.dot(hd, wd2_ref[...], preferred_element_type=jnp.float32) + bd2_ref[...]

    # Lane-dense stores (full 128-lane writes, no masked vst).
    xhat_ref[...] = x_hat
    kl_ref[...] = jnp.broadcast_to(kl, kl_ref.shape)


def _pad2d(a, rows, cols):
    return jnp.zeros((rows, cols), jnp.float32).at[:a.shape[0], :a.shape[1]].set(a)


def pack_params(p):
    """Zero-pad logical (in, out) weights to 128-lane tiles and fuse W2|W3."""
    w1 = _pad2d(p["w1"], F_PAD, F_PAD)
    b1 = _pad2d(p["b1"], 1, F_PAD)

    w23 = jnp.zeros((F_PAD, F2_PAD), jnp.float32)
    w23 = w23.at[:p["w2"].shape[0], :p["w2"].shape[1]].set(p["w2"])
    w23 = w23.at[:p["w3"].shape[0], F_PAD:F_PAD + p["w3"].shape[1]].set(p["w3"])
    b23 = jnp.zeros((1, F2_PAD), jnp.float32)
    b23 = b23.at[:, :p["b2"].shape[1]].set(p["b2"])
    b23 = b23.at[:, F_PAD:F_PAD + p["b3"].shape[1]].set(p["b3"])

    wd1 = _pad2d(p["wd1"], F_PAD, F_PAD)
    bd1 = _pad2d(p["bd1"], 1, F_PAD)
    wd2 = _pad2d(p["wd2"], F_PAD, F_PAD)
    bd2 = _pad2d(p["bd2"], 1, F_PAD)
    return (w1, b1, w23, b23, wd1, bd1, wd2, bd2)


def vae_forward(x, eps, packed, *, tb=1024):
    """x: (B, n_state) f32, eps: (B, latent) f32, packed: output of pack_params."""
    B, n_state = x.shape
    latent = eps.shape[1]

    # Batch tile: TB=1024 fits comfortably in the default 32 MiB scoped VMEM on
    # all of v5e/v6e/v7x (double-buffered f32 tiles + ~0.4 MB resident weights).
    bp = _round_up(B, 8)
    if bp <= tb:
        tb = bp
    else:
        bp = _round_up(B, tb)
    grid = (bp // tb,)

    # Pack [x | eps] into one lane-padded slab -> one activation input stream.
    xe = jnp.zeros((bp, F2_PAD), jnp.float32)
    xe = xe.at[:B, :n_state].set(x)
    xe = xe.at[:B, F_PAD:F_PAD + latent].set(eps)

    w1, b1, w23, b23, wd1, bd1, wd2, bd2 = packed

    def resident(a):
        # Same block index every grid step => stays VMEM-resident, no re-DMA.
        return pl.BlockSpec(a.shape, lambda i: (0,) * a.ndim)

    flops = 2 * bp * (F_PAD * F_PAD * 3 + F_PAD * F2_PAD)
    weight_bytes = sum(int(a.size) * 4 for a in packed)
    bytes_accessed = 4 * (bp * F2_PAD + 2 * bp * F_PAD) + weight_bytes

    x_hat_p, kl_p = pl.pallas_call(
        _vae_kernel,
        out_shape=(jax.ShapeDtypeStruct((bp, F_PAD), jnp.float32),
                   jax.ShapeDtypeStruct((bp, F_PAD), jnp.float32)),
        grid=grid,
        in_specs=[pl.BlockSpec((tb, F2_PAD), lambda i: (i, 0)),
                  resident(w1), resident(b1),
                  resident(w23), resident(b23),
                  resident(wd1), resident(bd1),
                  resident(wd2), resident(bd2)],
        out_specs=(pl.BlockSpec((tb, F_PAD), lambda i: (i, 0)),
                   pl.BlockSpec((tb, F_PAD), lambda i: (i, 0))),
        compiler_params=pltpu.CompilerParams(
            dimension_semantics=("parallel",)),   # megacore-shard batch on v7x
        cost_estimate=pl.CostEstimate(
            flops=flops, transcendentals=bp * F_PAD,
            bytes_accessed=bytes_accessed),
    )(xe, w1, b1, w23, b23, wd1, bd1, wd2, bd2)

    # TODO(synk): for large-batch v6e/v7x runs, store xe/weights in bf16 (f32
    # accumulation) to halve activation DMA bytes; kept f32 here for exactness.
    return x_hat_p[:B, :n_state], kl_p[:B, 0]


def init_params(key, n_state, latent_dims, hidden=48):
    """Deterministic synthetic parameters; weights stored already transposed (in, out)."""
    ks = jax.random.split(key, 10)

    def lin(kw, kb, fan_in, fan_out):
        bound = 1.0 / jnp.sqrt(fan_in)
        w = jax.random.uniform(kw, (fan_in, fan_out), jnp.float32, -bound, bound)
        b = jax.random.uniform(kb, (1, fan_out), jnp.float32, -bound, bound)
        return w, b

    w1, b1 = lin(ks[0], ks[1], n_state, hidden)
    w2, b2 = lin(ks[2], ks[3], hidden, latent_dims)
    w3, b3 = lin(ks[4], ks[5], hidden, latent_dims)
    wd1, bd1 = lin(ks[6], ks[7], latent_dims, hidden)
    wd2, bd2 = lin(ks[8], ks[9], hidden, n_state)
    return dict(w1=w1, b1=b1, w2=w2, b2=b2, w3=w3, b3=b3,
                wd1=wd1, bd1=bd1, wd2=wd2, bd2=bd2)


if __name__ == "__main__":
    # Pendulum-v0: observation_space.shape == (3,) -> n_state = 3
    n_state = 3
    latent_dims = 8
    batch = 8

    key = jax.random.PRNGKey(0)
    k_x, k_eps, k_par = jax.random.split(key, 3)

    x = jax.random.normal(k_x, (batch, n_state), jnp.float32)
    eps = jax.random.normal(k_eps, (batch, latent_dims), jnp.float32)  # N(0,1) sample
    params = init_params(k_par, n_state, latent_dims)
    packed = pack_params(params)

    fwd = jax.jit(vae_forward)
    x_hat, kl = fwd(x, eps, packed)
    jax.block_until_ready((x_hat, kl))

    # sanity against pure-JAX reference on the un-padded logical params
    def ref(x, eps, p):
        h = jnp.maximum(x @ p["w1"] + p["b1"], 0.0)
        mu = h @ p["w2"] + p["b2"]
        sg = jnp.exp(h @ p["w3"] + p["b3"])
        z = mu + sg * eps
        kl = jnp.sum(-jnp.log(sg) - (z - mu) ** 2 / (2 * sg ** 2) + 0.5 * z ** 2, -1)
        hd = jnp.maximum(z @ p["wd1"] + p["bd1"], 0.0)
        return hd @ p["wd2"] + p["bd2"], kl

    xr, kr = ref(x, eps, params)
    assert jnp.allclose(x_hat, xr, atol=1e-5), "x_hat mismatch"
    assert jnp.allclose(kl, kr, atol=1e-4), "kl mismatch"

    print("KERNEL_OK")
</pallas_src>

<mosaic_0001>
module attributes {stable_mosaic.version = 11 : i64} {
  func.func @_vae_kernel(%arg0: i32, %arg1: memref<8x256xf32, #tpu.memory_space<vmem>>, %arg2: memref<128x128xf32, #tpu.memory_space<vmem>>, %arg3: memref<1x128xf32, #tpu.memory_space<vmem>>, %arg4: memref<128x256xf32, #tpu.memory_space<vmem>>, %arg5: memref<1x256xf32, #tpu.memory_space<vmem>>, %arg6: memref<128x128xf32, #tpu.memory_space<vmem>>, %arg7: memref<1x128xf32, #tpu.memory_space<vmem>>, %arg8: memref<128x128xf32, #tpu.memory_space<vmem>>, %arg9: memref<1x128xf32, #tpu.memory_space<vmem>>, %arg10: memref<8x128xf32, #tpu.memory_space<vmem>>, %arg11: memref<8x128xf32, #tpu.memory_space<vmem>>) attributes {dimension_semantics = [#tpu.dimension_semantics<parallel>], iteration_bounds = array<i64: 1>, scalar_prefetch = 0 : i64, scratch_operands = 0 : i64, tpu.core_type = #tpu.core_type<tc>, window_params = [{transform_indices = @transform_0, window_bounds = array<i64: 8, 256>}, {pipeline_mode = #tpu.pipeline_mode<synchronous>, transform_indices = @transform_1, window_bounds = array<i64: 128, 128>}, {pipeline_mode = #tpu.pipeline_mode<synchronous>, transform_indices = @transform_2, window_bounds = array<i64: 1, 128>}, {pipeline_mode = #tpu.pipeline_mode<synchronous>, transform_indices = @transform_3, window_bounds = array<i64: 128, 256>}, {pipeline_mode = #tpu.pipeline_mode<synchronous>, transform_indices = @transform_4, window_bounds = array<i64: 1, 256>}, {pipeline_mode = #tpu.pipeline_mode<synchronous>, transform_indices = @transform_5, window_bounds = array<i64: 128, 128>}, {pipeline_mode = #tpu.pipeline_mode<synchronous>, transform_indices = @transform_6, window_bounds = array<i64: 1, 128>}, {pipeline_mode = #tpu.pipeline_mode<synchronous>, transform_indices = @transform_7, window_bounds = array<i64: 128, 128>}, {pipeline_mode = #tpu.pipeline_mode<synchronous>, transform_indices = @transform_8, window_bounds = array<i64: 1, 128>}, {transform_indices = @transform_9, window_bounds = array<i64: 8, 128>}, {transform_indices = @transform_10, window_bounds = array<i64: 8, 128>}]} {
    %c0 = arith.constant 0 : index
    %c0_0 = arith.constant 0 : index
    %0 = vector.load %arg1[%c0, %c0_0] : memref<8x256xf32, #tpu.memory_space<vmem>>, vector<8x128xf32>
    %c0_1 = arith.constant 0 : index
    %c128 = arith.constant 128 : index
    %1 = vector.load %arg1[%c0_1, %c128] : memref<8x256xf32, #tpu.memory_space<vmem>>, vector<8x128xf32>
    %c0_2 = arith.constant 0 : index
    %c0_3 = arith.constant 0 : index
    %2 = vector.load %arg2[%c0_2, %c0_3] : memref<128x128xf32, #tpu.memory_space<vmem>>, vector<128x128xf32>
    %cst = arith.constant dense<0.000000e+00> : vector<8x128xf32>
    %3 = tpu.matmul %0, %2, %cst {dimension_numbers = #tpu.dot_dimension_numbers<[1], [0], [0], [1], [0, 0, 1, 1], [], []>} : vector<8x128xf32>, vector<128x128xf32>, vector<8x128xf32> -> vector<8x128xf32>
    %c0_4 = arith.constant 0 : index
    %c0_5 = arith.constant 0 : index
    %4 = vector.load %arg3[%c0_4, %c0_5] : memref<1x128xf32, #tpu.memory_space<vmem>>, vector<1x128xf32>
    %5 = vector.broadcast %4 : vector<1x128xf32> to vector<8x128xf32>
    %6 = arith.addf %3, %5 : vector<8x128xf32>
    %cst_6 = arith.constant 0.000000e+00 : f32
    %7 = vector.broadcast %cst_6 : f32 to vector<8x128xf32>
    %8 = arith.maximumf %6, %7 : vector<8x128xf32>
    %c0_7 = arith.constant 0 : index
    %c0_8 = arith.constant 0 : index
    %9 = vector.load %arg4[%c0_7, %c0_8] : memref<128x256xf32, #tpu.memory_space<vmem>>, vector<128x256xf32>
    %cst_9 = arith.constant dense<0.000000e+00> : vector<8x256xf32>
    %10 = tpu.matmul %8, %9, %cst_9 {dimension_numbers = #tpu.dot_dimension_numbers<[1], [0], [0], [1], [0, 0, 1, 1], [], []>} : vector<8x128xf32>, vector<128x256xf32>, vector<8x256xf32> -> vector<8x256xf32>
    %c0_10 = arith.constant 0 : index
    %c0_11 = arith.constant 0 : index
    %11 = vector.load %arg5[%c0_10, %c0_11] : memref<1x256xf32, #tpu.memory_space<vmem>>, vector<1x256xf32>
    %12 = vector.broadcast %11 : vector<1x256xf32> to vector<8x256xf32>
    %13 = arith.addf %10, %12 : vector<8x256xf32>
    %14 = vector.extract_strided_slice %13 {offsets = [0, 0], sizes = [8, 128], strides = [1, 1]} : vector<8x256xf32> to vector<8x128xf32>
    %15 = vector.extract_strided_slice %13 {offsets = [0, 128], sizes = [8, 128], strides = [1, 1]} : vector<8x256xf32> to vector<8x128xf32>
    %16 = math.exp %15 : vector<8x128xf32>
    %17 = arith.mulf %16, %1 : vector<8x128xf32>
    %18 = arith.addf %14, %17 : vector<8x128xf32>
    %cst_12 = arith.constant 0.000000e+00 : f32
    %19 = vector.broadcast %cst_12 : f32 to vector<8x128xf32>
    %20 = arith.subf %19, %15 : vector<8x128xf32>
    %cst_13 = arith.constant 5.000000e-01 : f32
    %21 = vector.broadcast %cst_13 : f32 to vector<8x128xf32>
    %22 = arith.mulf %21, %1 : vector<8x128xf32>
    %23 = arith.mulf %22, %1 : vector<8x128xf32>
    %24 = arith.subf %20, %23 : vector<8x128xf32>
    %cst_14 = arith.constant 5.000000e-01 : f32
    %25 = vector.broadcast %cst_14 : f32 to vector<8x128xf32>
    %26 = arith.mulf %25, %18 : vector<8x128xf32>
    %27 = arith.mulf %26, %18 : vector<8x128xf32>
    %28 = arith.addf %24, %27 : vector<8x128xf32>
    %cst_15 = arith.constant dense<0.000000e+00> : vector<8xf32>
    %29 = vector.multi_reduction <add>, %28, %cst_15 [1] : vector<8x128xf32> to vector<8xf32>
    %30 = vector.shape_cast %29 : vector<8xf32> to vector<8x1xf32>
    %c0_16 = arith.constant 0 : index
    %c0_17 = arith.constant 0 : index
    %31 = vector.load %arg6[%c0_16, %c0_17] : memref<128x128xf32, #tpu.memory_space<vmem>>, vector<128x128xf32>
    %cst_18 = arith.constant dense<0.000000e+00> : vector<8x128xf32>
    %32 = tpu.matmul %18, %31, %cst_18 {dimension_numbers = #tpu.dot_dimension_numbers<[1], [0], [0], [1], [0, 0, 1, 1], [], []>} : vector<8x128xf32>, vector<128x128xf32>, vector<8x128xf32> -> vector<8x128xf32>
    %c0_19 = arith.constant 0 : index
    %c0_20 = arith.constant 0 : index
    %33 = vector.load %arg7[%c0_19, %c0_20] : memref<1x128xf32, #tpu.memory_space<vmem>>, vector<1x128xf32>
    %34 = vector.broadcast %33 : vector<1x128xf32> to vector<8x128xf32>
    %35 = arith.addf %32, %34 : vector<8x128xf32>
    %cst_21 = arith.constant 0.000000e+00 : f32
    %36 = vector.broadcast %cst_21 : f32 to vector<8x128xf32>
    %37 = arith.maximumf %35, %36 : vector<8x128xf32>
    %c0_22 = arith.constant 0 : index
    %c0_23 = arith.constant 0 : index
    %38 = vector.load %arg8[%c0_22, %c0_23] : memref<128x128xf32, #tpu.memory_space<vmem>>, vector<128x128xf32>
    %cst_24 = arith.constant dense<0.000000e+00> : vector<8x128xf32>
    %39 = tpu.matmul %37, %38, %cst_24 {dimension_numbers = #tpu.dot_dimension_numbers<[1], [0], [0], [1], [0, 0, 1, 1], [], []>} : vector<8x128xf32>, vector<128x128xf32>, vector<8x128xf32> -> vector<8x128xf32>
    %c0_25 = arith.constant 0 : index
    %c0_26 = arith.constant 0 : index
    %40 = vector.load %arg9[%c0_25, %c0_26] : memref<1x128xf32, #tpu.memory_space<vmem>>, vector<1x128xf32>
    %41 = vector.broadcast %40 : vector<1x128xf32> to vector<8x128xf32>
    %42 = arith.addf %39, %41 : vector<8x128xf32>
    %c0_27 = arith.constant 0 : index
    %c0_28 = arith.constant 0 : index
    %43 = vector.load %arg10[%c0_27, %c0_28] : memref<8x128xf32, #tpu.memory_space<vmem>>, vector<8x128xf32>
    tpu.vector_store %arg10[%c0_27, %c0_28], %42 {strides = array<i32>} : memref<8x128xf32, #tpu.memory_space<vmem>>, vector<8x128xf32>,
    %44 = vector.shape_cast %30 : vector<8x1xf32> to vector<8x1xf32>
    %45 = vector.broadcast %44 : vector<8x1xf32> to vector<8x128xf32>
    %c0_29 = arith.constant 0 : index
    %c0_30 = arith.constant 0 : index
    %46 = vector.load %arg11[%c0_29, %c0_30] : memref<8x128xf32, #tpu.memory_space<vmem>>, vector<8x128xf32>
    tpu.vector_store %arg11[%c0_29, %c0_30], %45 {strides = array<i32>} : memref<8x128xf32, #tpu.memory_space<vmem>>, vector<8x128xf32>,
    return
  }
  func.func @transform_0(%arg0: i32) -> (i32, i32) {
    %c0_i32 = arith.constant 0 : i32
    %c0_i32_0 = arith.constant 0 : i32
    return %arg0, %c0_i32 : i32, i32
  }
  func.func @transform_1(%arg0: i32) -> (i32, i32) {
    %c0_i32 = arith.constant 0 : i32
    %c0_i32_0 = arith.constant 0 : i32
    %c0_i32_1 = arith.constant 0 : i32
    return %c0_i32, %c0_i32_0 : i32, i32
  }
  func.func @transform_2(%arg0: i32) -> (i32, i32) {
    %c0_i32 = arith.constant 0 : i32
    %c0_i32_0 = arith.constant 0 : i32
    %c0_i32_1 = arith.constant 0 : i32
    return %c0_i32, %c0_i32_0 : i32, i32
  }
  func.func @transform_3(%arg0: i32) -> (i32, i32) {
    %c0_i32 = arith.constant 0 : i32
    %c0_i32_0 = arith.constant 0 : i32
    %c0_i32_1 = arith.constant 0 : i32
    return %c0_i32, %c0_i32_0 : i32, i32
  }
  func.func @transform_4(%arg0: i32) -> (i32, i32) {
    %c0_i32 = arith.constant 0 : i32
    %c0_i32_0 = arith.constant 0 : i32
    %c0_i32_1 = arith.constant 0 : i32
    return %c0_i32, %c0_i32_0 : i32, i32
  }
  func.func @transform_5(%arg0: i32) -> (i32, i32) {
    %c0_i32 = arith.constant 0 : i32
    %c0_i32_0 = arith.constant 0 : i32
    %c0_i32_1 = arith.constant 0 : i32
    return %c0_i32, %c0_i32_0 : i32, i32
  }
  func.func @transform_6(%arg0: i32) -> (i32, i32) {
    %c0_i32 = arith.constant 0 : i32
    %c0_i32_0 = arith.constant 0 : i32
    %c0_i32_1 = arith.constant 0 : i32
    return %c0_i32, %c0_i32_0 : i32, i32
  }
  func.func @transform_7(%arg0: i32) -> (i32, i32) {
    %c0_i32 = arith.constant 0 : i32
    %c0_i32_0 = arith.constant 0 : i32
    %c0_i32_1 = arith.constant 0 : i32
    return %c0_i32, %c0_i32_0 : i32, i32
  }
  func.func @transform_8(%arg0: i32) -> (i32, i32) {
    %c0_i32 = arith.constant 0 : i32
    %c0_i32_0 = arith.constant 0 : i32
    %c0_i32_1 = arith.constant 0 : i32
    return %c0_i32, %c0_i32_0 : i32, i32
  }
  func.func @transform_9(%arg0: i32) -> (i32, i32) {
    %c0_i32 = arith.constant 0 : i32
    %c0_i32_0 = arith.constant 0 : i32
    return %arg0, %c0_i32 : i32, i32
  }
  func.func @transform_10(%arg0: i32) -> (i32, i32) {
    %c0_i32 = arith.constant 0 : i32
    %c0_i32_0 = arith.constant 0 : i32
    return %arg0, %c0_i32 : i32, i32
  }
}

</mosaic_0001>

<bundles_post_ra>
// kernel: vae_forward.1
= control target key start
LH: loop header
LB: loop body
LE: loop exit
PB: predicated region body
PF: predicated region fallthrough
CT: control target
= control target key end

     0   :  { %16 = vsyncpa [#allocation3], 0  ;;  %s1068_s0 = inlined_call_operand.vmem [shape: f32[8,256], index: 0, kind: input, shape index: {}]   ;;  %s1069_s1 = inlined_call_operand.hbm [shape: f32[128,128], index: 1, kind: input, shape index: {}]   ;;  %s1070_s2 = inlined_call_operand.vmem [shape: f32[1,128], index: 2, kind: input, shape index: {}]   ;;  %s1071_s3 = inlined_call_operand.hbm [shape: f32[128,256], index: 3, kind: input, shape index: {}]   ;;  %s1072_s4 = inlined_call_operand.vmem [shape: f32[1,256], index: 4, kind: input, shape index: {}]   ;;  %s1073_s5 = inlined_call_operand.hbm [shape: f32[128,128], index: 5, kind: input, shape index: {}]   ;;  %s1074_s6 = inlined_call_operand.vmem [shape: f32[1,128], index: 6, kind: input, shape index: {}]   ;;  %s1075_s7 = inlined_call_operand.hbm [shape: f32[128,128], index: 7, kind: input, shape index: {}]   ;;  %s1076_s8 = inlined_call_operand.vmem [shape: f32[1,128], index: 8, kind: input, shape index: {}]   ;;  %s1077_s9 = inlined_call_operand.vmem [shape: f32[8,128], index: 9, kind: output, shape index: {0}]   ;;  %s1078_s10 = inlined_call_operand.vmem [shape: f32[8,128], index: 10, kind: output, shape index: {1}]  }
   0x1   :  { %17 = vsyncpa [#allocation5], 0 }
   0x2   :  { %18 = vsyncpa [#allocation8], 0  ;;  %s883_s13 = smov [#allocation4]   ;;  %s789_s17 = scalar_lea.hbm %s1071_s3, 4096 }
   0x3   :  { %s40_s14 = sshll.u32 %s883_s13, 4  ;;  %p790_p0 = scmp.ne.s32.totalorder %s1071_s3, %s789_s17  ;;  %s41_s14 = int_to_ptr.vmem [resolvable:$true] %s40_s14 }
   0x4   :  { %p793_p1 = scmp.lt.u32.totalorder %s789_s17, %s1071_s3 }
   0x6   :  { %p795_p2 = pnand %p793_p1, %p790_p0 }
   0x8   :  { %798 = shalt.err (!%p795_p2)
}
   0x9   :  { %s799_s22 = scalar_lea.vmem %s41_s14, 4096  ;;  %p804_p4 = scmp.lt.s32.totalorder %s41_s14, %s41_s14 }
   0xa   :  { %p800_p3 = scmp.ne.s32.totalorder %s41_s14, %s799_s22  ;;  %p805_p5 = scmp.lt.s32.totalorder %s799_s22, %s799_s22 }
   0xc   :  { %p806_p6 = por %p805_p5, %p804_p4 }
   0xe   :  { %p807_p7 = pnand %p806_p6, %p800_p3 }
  0x10   :  { %810 = shalt.err (!%p807_p7)
}
  0x11   :  { %s884_s23 = smov 256   ;;  %s885_s24 = smov 16  }
  0x12   :  { %46 = dma.hbm_to_vmem [thread:$0]  %s1071_s3, 4096, %s41_s14, [#allocation5], %s884_s23, %s884_s23, %s885_s24  }
  0x13   :  { %s886_s27 = smov [#allocation2]   ;;  %s811_s11 = scalar_lea.hbm %s1069_s1, 2048 }
  0x14   :  { %s26_s28 = sshll.u32 %s886_s27, 4  ;;  %p812_p8 = scmp.ne.s32.totalorder %s1069_s1, %s811_s11  ;;  %s27_s28 = int_to_ptr.vmem [resolvable:$true] %s26_s28 }
  0x15   :  { %p815_p9 = scmp.lt.u32.totalorder %s811_s11, %s1069_s1 }
  0x17   :  { %p817_p10 = pnand %p815_p9, %p812_p8 }
  0x19   :  { %820 = shalt.err (!%p817_p10)
}
  0x1a   :  { %s821_s17 = scalar_lea.vmem %s27_s28, 2048  ;;  %p826_p12 = scmp.lt.s32.totalorder %s27_s28, %s27_s28 }
  0x1b   :  { %p822_p11 = scmp.ne.s32.totalorder %s27_s28, %s821_s17  ;;  %p827_p13 = scmp.lt.s32.totalorder %s821_s17, %s821_s17 }
  0x1d   :  { %p828_p0 = por %p827_p13, %p826_p12 }
  0x1f   :  { %p829_p1 = pnand %p828_p0, %p822_p11 }
  0x21   :  { %832 = shalt.err (!%p829_p1)
}
  0x22   :  { %s887_s3 = smov 128   ;;  %s888_s14 = smov 8  }
  0x23   :  { %32 = dma.hbm_to_vmem [thread:$0]  %s1069_s1, 2048, %s27_s28, [#allocation3], %s887_s3, %s887_s3, %s888_s14  }
  0x24   :  { %s889_s20 = smov [#allocation6]   ;;  %s890_s22 = smov [#allocation7]  }
  0x25   :  { %s54_s21 = sshll.u32 %s889_s20, 4  ;;  %s68_s23 = sshll.u32 %s890_s22, 4  ;;  %s55_s21 = int_to_ptr.vmem [resolvable:$true] %s54_s21  ;;  %s976_s23 = int_to_ptr.vmem [resolvable:$true] %s68_s23 }
  0x26   :  { %s833_s26 = scalar_lea.hbm %s1073_s5, 2048 }
  0x27   :  { %p834_p2 = scmp.ne.s32.totalorder %s1073_s5, %s833_s26  ;;  %p837_p3 = scmp.lt.u32.totalorder %s833_s26, %s1073_s5 }
  0x29   :  { %p839_p4 = pnand %p837_p3, %p834_p2 }
  0x2b   :  { %842 = shalt.err (!%p839_p4)
}
  0x2c   :  { %s843_s1 = scalar_lea.vmem %s55_s21, 2048  ;;  %p848_p6 = scmp.lt.s32.totalorder %s55_s21, %s55_s21 }
  0x2d   :  { %p844_p5 = scmp.ne.s32.totalorder %s55_s21, %s843_s1  ;;  %p849_p7 = scmp.lt.s32.totalorder %s843_s1, %s843_s1 }
  0x2f   :  { %p850_p8 = por %p849_p7, %p848_p6 }
  0x31   :  { %p851_p9 = pnand %p850_p8, %p844_p5 }
  0x33   :  { %854 = shalt.err (!%p851_p9)
}
  0x34   :  { %60 = dma.hbm_to_vmem [thread:$0]  %s1073_s5, 2048, %s55_s21, [#allocation5], %s887_s3, %s887_s3, %s888_s14  }
  0x35   :  { %s855_s16 = scalar_lea.hbm %s1075_s7, 2048 }
  0x36   :  { %p856_p10 = scmp.ne.s32.totalorder %s1075_s7, %s855_s16  ;;  %p859_p11 = scmp.lt.u32.totalorder %s855_s16, %s1075_s7 }
  0x38   :  { %p861_p12 = pnand %p859_p11, %p856_p10 }
  0x3a   :  { %864 = shalt.err (!%p861_p12)
}
  0x3b   :  { %s865_s22 = scalar_lea.vmem %s976_s23, 2048  ;;  %p870_p0 = scmp.lt.s32.totalorder %s976_s23, %s976_s23 }
  0x3c   :  { %p866_p13 = scmp.ne.s32.totalorder %s976_s23, %s865_s22  ;;  %p871_p1 = scmp.lt.s32.totalorder %s865_s22, %s865_s22 }
  0x3e   :  { %p872_p2 = por %p871_p1, %p870_p0 }
  0x40   :  { %p873_p3 = pnand %p872_p2, %p866_p13 }
  0x42   :  { %876 = shalt.err (!%p873_p3)
}
  0x43   :  { %74 = dma.hbm_to_vmem [thread:$0]  %s1075_s7, 2048, %s976_s23, [#allocation8], %s887_s3, %s887_s3, %s888_s14  }
  0x44   :  { %877 = dma.done.wait [#allocation3], 2048  }
  0x45   :  { %878 = vsyncadd [#allocation3], 4294965248 }
  0x46   :  { %879 = dma.done.wait [#allocation5], 6144  }
  0x47   :  { %880 = vsyncadd [#allocation5], 4294961152 }
  0x48   :  { %881 = dma.done.wait [#allocation8], 2048  }
  0x49   :  { %882 = vsyncadd [#allocation8], 4294965248  ;;  %v891_v0 = vmov 0.0|0.0   ;;  %vm892_vm0 = vmmov 0   ;;  %v893_v1 = vmov 0.0   ;;  %v91_v2 = vld [vmem:[#allocation2] sm:$0xff] }
  0x4a   :  { %672 = vmatprep.subr.bf16.mxu0 %v891_v0  ;;  %599 = vmatprep.mubr.msk.f32.mxu0 %vm892_vm0, %v893_v1  ;;  %v92_v3 = vld [vmem:[#allocation2 + $0x8] sm:$0xff]  ;;  %v93_v4 = vld [vmem:[#allocation2 + $0x10] sm:$0xff]  ;;  %v94_v6 = vld [vmem:[#allocation2 + $0x18] sm:$0xff] }
  0x4b   :  { %293 = vmatprep.mubr.f32.mxu1 %v893_v1  ;;  %v673_v5 = vpack.c.bf16 %v92_v3, %v91_v2  ;;  %v676_v7 = vpack.c.bf16 %v94_v6, %v93_v4  ;;  %v95_v8 = vld [vmem:[#allocation2 + $0x20] sm:$0xff]  ;;  %v96_v9 = vld [vmem:[#allocation2 + $0x28] sm:$0xff]  ;;  %v97_v11 = vld [vmem:[#allocation2 + $0x30] sm:$0xff] }
  0x4c   :  { %v186_v10 = vld [vmem:[#allocation4 + $0x8] sm:$0xff]  ;;  %v98_v12 = vld [vmem:[#allocation2 + $0x38] sm:$0xff]  ;;  %v185_v14 = vld [vmem:[#allocation4] sm:$0xff]  ;;  %v679_v16 = vpack.c.bf16 %v96_v9, %v95_v8 }
  0x4d   :  { %674 = vmatpush3.bf16.msra.mxu0 %v673_v5  ;;  %v188_v13 = vld [vmem:[#allocation4 + $0x18] sm:$0xff]  ;;  %v187_v15 = vld [vmem:[#allocation4 + $0x10] sm:$0xff]  ;;  %v190_v19 = vld [vmem:[#allocation4 + $0x28] sm:$0xff]  ;;  %v682_v27 = vpack.c.bf16 %v98_v12, %v97_v11 }
  0x4e   :  { %675 = vmatprep.subr.bf16.mxu0 %v891_v0  ;;  %v696_v17 = vpack.c.bf16 %v188_v13, %v186_v10  ;;  %v698_v18 = vpack.c.bf16 %v187_v15, %v185_v14  ;;  %v192_v20 = vld [vmem:[#allocation4 + $0x38] sm:$0xff]  ;;  %v189_v21 = vld [vmem:[#allocation4 + $0x20] sm:$0xff]  ;;  %v191_v23 = vld [vmem:[#allocation4 + $0x30] sm:$0xff] }
  0x4f   :  { %v700_v22 = vpack.c.bf16 %v192_v20, %v190_v19  ;;  %v194_v24 = vld [vmem:[#allocation4 + $0x48] sm:$0xff]  ;;  %v196_v25 = vld [vmem:[#allocation4 + $0x58] sm:$0xff]  ;;  %v702_v26 = vpack.c.bf16 %v191_v23, %v189_v21  ;;  %v99_v28 = vld [vmem:[#allocation2 + $0x40] sm:$0xff] }
  0x50   :  { %697 = vmatprep.subr.bf16.mxu1 %v696_v17  ;;  %v704_v29 = vpack.c.bf16 %v196_v25, %v194_v24  ;;  %v193_v30 = vld [vmem:[#allocation4 + $0x40] sm:$0xff]  ;;  %v195_v31 = vld [vmem:[#allocation4 + $0x50] sm:$0xff]  ;;  %v100_v32 = vld [vmem:[#allocation2 + $0x48] sm:$0xff] }
  0x51   :  { %677 = vmatpush3.bf16.msra.mxu0 %v676_v7  ;;  %699 = vmatpush1.bf16.msra.mxu1 %v698_v18  ;;  %v198_v33 = vld [vmem:[#allocation4 + $0x68] sm:$0xff]  ;;  %v200_v34 = vld [vmem:[#allocation4 + $0x78] sm:$0xff]  ;;  %v706_v35 = vpack.c.bf16 %v195_v31, %v193_v30  ;;  %v685_v36 = vpack.c.bf16 %v100_v32, %v99_v28  ;;  %v101_v37 = vld [vmem:[#allocation2 + $0x50] sm:$0xff] }
  0x52   :  { %678 = vmatprep.subr.bf16.mxu0 %v891_v0  ;;  %701 = vmatprep.subr.bf16.mxu1 %v700_v22  ;;  %v708_v38 = vpack.c.bf16 %v200_v34, %v198_v33  ;;  %v197_v39 = vld [vmem:[#allocation4 + $0x60] sm:$0xff]  ;;  %v199_v40 = vld [vmem:[#allocation4 + $0x70] sm:$0xff]  ;;  %v102_v41 = vld [vmem:[#allocation2 + $0x58] sm:$0xff] }
  0x53   :  { %v202_v42 = vld [vmem:[#allocation4 + $0x88] sm:$0xff]  ;;  %v204_v43 = vld [vmem:[#allocation4 + $0x98] sm:$0xff]  ;;  %v710_v44 = vpack.c.bf16 %v199_v40, %v197_v39  ;;  %v688_v45 = vpack.c.bf16 %v102_v41, %v101_v37  ;;  %v103_v46 = vld [vmem:[#allocation2 + $0x60] sm:$0xff]  ;;  %v219_v41 = vlaneseq }
  0x54   :  { %v712_v47 = vpack.c.bf16 %v204_v43, %v202_v42  ;;  %v201_v48 = vld [vmem:[#allocation4 + $0x80] sm:$0xff]  ;;  %v203_v49 = vld [vmem:[#allocation4 + $0x90] sm:$0xff]  ;;  %v104_v50 = vld [vmem:[#allocation2 + $0x68] sm:$0xff] }
  0x55   :  { %680 = vmatpush3.bf16.msra.mxu0 %v679_v16  ;;  %703 = vmatpush1.bf16.msra.mxu1 %v702_v26  ;;  %v206_v51 = vld [vmem:[#allocation4 + $0xa8] sm:$0xff]  ;;  %v208_v52 = vld [vmem:[#allocation4 + $0xb8] sm:$0xff]  ;;  %v714_v53 = vpack.c.bf16 %v203_v49, %v201_v48  ;;  %v691_v54 = vpack.c.bf16 %v104_v50, %v103_v46  ;;  %v105_v55 = vld [vmem:[#allocation2 + $0x70] sm:$0xff]  ;;  %v220_v42 = vshrl.u32 %v219_v41, 7 }
  0x56   :  { %681 = vmatprep.subr.bf16.mxu0 %v891_v0  ;;  %705 = vmatprep.subr.bf16.mxu1 %v704_v29  ;;  %v716_v56 = vpack.c.bf16 %v208_v52, %v206_v51  ;;  %v205_v57 = vld [vmem:[#allocation4 + $0xa0] sm:$0xff]  ;;  %v207_v58 = vld [vmem:[#allocation4 + $0xb0] sm:$0xff]  ;;  %v106_v59 = vld [vmem:[#allocation2 + $0x78] sm:$0xff] }
  0x57   :  { %v210_v60 = vld [vmem:[#allocation4 + $0xc8] sm:$0xff]  ;;  %v212_v61 = vld [vmem:[#allocation4 + $0xd8] sm:$0xff]  ;;  %v718_v62 = vpack.c.bf16 %v207_v58, %v205_v57  ;;  %v694_v63 = vpack.c.bf16 %v106_v59, %v105_v55  ;;  %v209_v3 = vld [vmem:[#allocation4 + $0xc0] sm:$0xff]  ;;  %v225_v43 = vsub.s32 1, %v220_v42  ;;  %v221_v50 = vsub.s32 0, %v220_v42 }
  0x58   :  { %v720_v2 = vpack.c.bf16 %v212_v61, %v210_v60  ;;  %v211_v4 = vld [vmem:[#allocation4 + $0xd0] sm:$0xff]  ;;  %v89_v6 = vld [vmem:[%s1068_s0] sm:$0xff]  ;;  %v214_v7 = vld [vmem:[#allocation4 + $0xe8] sm:$0xff] }
  0x59   :  { %683 = vmatpush3.bf16.msra.mxu0 %v682_v27  ;;  %707 = vmatpush1.bf16.msra.mxu1 %v706_v35  ;;  %v722_v5 = vpack.c.bf16 %v211_v4, %v209_v3  ;;  %v216_v8 = vld [vmem:[#allocation4 + $0xf8] sm:$0xff]  ;;  %v213_v10 = vld [vmem:[#allocation4 + $0xe0] sm:$0xff]  ;;  %v215_v11 = vld [vmem:[#allocation4 + $0xf0] sm:$0xff] }
  0x5a   :  { %684 = vmatprep.subr.bf16.mxu0 %v891_v0  ;;  %709 = vmatprep.subr.bf16.mxu1 %v708_v38  ;;  %v724_v9 = vpack.c.bf16 %v216_v8, %v214_v7  ;;  %v726_v12 = vpack.c.bf16 %v215_v11, %v213_v10  ;;  %v313_v13 = vld [vmem:[#allocation6] sm:$0xff]  ;;  %v314_v14 = vld [vmem:[#allocation6 + $0x8] sm:$0xff]  ;;  %v315_v15 = vld [vmem:[#allocation6 + $0x10] sm:$0xff] }
  0x5b   :  { %v729_v16 = vpack.c.bf16 %v314_v14, %v313_v13  ;;  %v316_v17 = vld [vmem:[#allocation6 + $0x18] sm:$0xff]  ;;  %v317_v19 = vld [vmem:[#allocation6 + $0x20] sm:$0xff]  ;;  %v318_v20 = vld [vmem:[#allocation6 + $0x28] sm:$0xff] }
  0x5c   :  { %v732_v18 = vpack.c.bf16 %v316_v17, %v315_v15  ;;  %v735_v21 = vpack.c.bf16 %v318_v20, %v317_v19  ;;  %v513_v22 = vld [vmem:[%s1070_s2] ss:$0 sm:$0xff]  ;;  %v319_v27 = vld [vmem:[#allocation6 + $0x30] sm:$0xff]  ;;  %v320_v28 = vld [vmem:[#allocation6 + $0x38] sm:$0xff] }
  0x5d   :  { %686 = vmatpush3.bf16.msra.mxu0 %v685_v36  ;;  %711 = vmatpush1.bf16.msra.mxu1 %v710_v44  ;;  %v738_v29 = vpack.c.bf16 %v320_v28, %v319_v27  ;;  %v321_v30 = vld [vmem:[#allocation6 + $0x40] sm:$0xff]  ;;  %v322_v31 = vld [vmem:[#allocation6 + $0x48] sm:$0xff]  ;;  %v323_v33 = vld [vmem:[#allocation6 + $0x50] sm:$0xff] }
  0x5e   :  { %687 = vmatprep.subr.bf16.mxu0 %v891_v0  ;;  %713 = vmatprep.subr.bf16.mxu1 %v712_v47  ;;  %v741_v32 = vpack.c.bf16 %v322_v31, %v321_v30  ;;  %v324_v34 = vld [vmem:[#allocation6 + $0x58] sm:$0xff]  ;;  %v325_v36 = vld [vmem:[#allocation6 + $0x60] sm:$0xff]  ;;  %v326_v37 = vld [vmem:[#allocation6 + $0x68] sm:$0xff] }
  0x5f   :  { %v744_v35 = vpack.c.bf16 %v324_v34, %v323_v33  ;;  %v747_v38 = vpack.c.bf16 %v326_v37, %v325_v36  ;;  %v328_v39 = vld [vmem:[#allocation6 + $0x78] sm:$0xff]  ;;  %v217_v44 = vld [vmem:[%s1072_s4] sm:$0x3]  ;;  %v90_v51 = vld [vmem:[%s1068_s0 + $0x8] sm:$0xff] }
  0x60   :  { %v222_v52 = vrot.slane %v217_v44, %v221_v50  ;;  %v408_v3 = vld [vmem:[#allocation7 + $0x8] sm:$0xff]  ;;  %v409_v4 = vld [vmem:[#allocation7 + $0x10] sm:$0xff]  ;;  %v411_v8 = vld [vmem:[#allocation7 + $0x20] sm:$0xff] }
  0x61   :  { %689 = vmatpush3.bf16.msra.mxu0 %v688_v45  ;;  %715 = vmatpush1.bf16.msra.mxu1 %v714_v53  ;;  %v226_v45 = vrot.slane %v217_v44, %v225_v43  ;;  %v305_v53 = vmul.f32 0.5, %v90_v51  ;;  %v413_v11 = vld [vmem:[#allocation7 + $0x30] sm:$0xff]  ;;  %v415_v14 = vld [vmem:[#allocation7 + $0x40] sm:$0xff]  ;;  %v416_v15 = vld [vmem:[#allocation7 + $0x48] sm:$0xff] }
  0x62   :  { %690 = vmatprep.subr.bf16.mxu0 %v891_v0  ;;  %717 = vmatprep.subr.bf16.mxu1 %v716_v56  ;;  %v417_v17 = vld [vmem:[#allocation7 + $0x50] sm:$0xff]  ;;  %v419_v20 = vld [vmem:[#allocation7 + $0x60] sm:$0xff] }
  0x63   :  { %v306_v59 = vmul.f32 %v305_v53, %v90_v51  ;;  %v514_v27 = vld [vmem:[%s1074_s6] ss:$0 sm:$0xff] }
  0x65   :  { %692 = vmatpush3.bf16.msra.mxu0 %v691_v54  ;;  %719 = vmatpush1.bf16.msra.mxu1 %v718_v62 }
  0x66   :  { %693 = vmatprep.subr.bf16.mxu0 %v891_v0  ;;  %721 = vmatprep.subr.bf16.mxu1 %v720_v2  ;;  %v407_v2 = vld [vmem:[#allocation7] sm:$0xff] }
  0x69   :  { %695 = vmatpush3.bf16.msra.mxu0 %v694_v63  ;;  %723 = vmatpush1.bf16.msra.mxu1 %v722_v5  ;;  %v753_v5 = vpack.c.bf16 %v408_v3, %v407_v2 }
  0x6a   :  { %728 = vmatprep.subr.bf16.mxu0 %v891_v0  ;;  %725 = vmatprep.subr.bf16.mxu1 %v724_v9  ;;  %v412_v9 = vld [vmem:[#allocation7 + $0x28] sm:$0xff] }
  0x6b   :  { %v759_v10 = vpack.c.bf16 %v412_v9, %v411_v8 }
  0x6c   :  { %600 = vmatmul.mubr.f32.vlgmr.msra.gmra.mrb[0].mxu0 %v89_v6  ;;  %v410_v6 = vld [vmem:[#allocation7 + $0x18] sm:$0xff] }
  0x6d   :  { %634 = vmatprep.mubr.msk.f32.mxu0 %vm892_vm0, %v893_v1  ;;  %727 = vmatpush1.bf16.msra.mxu1 %v726_v12  ;;  %v756_v7 = vpack.c.bf16 %v410_v6, %v409_v4  ;;  %v414_v12 = vld [vmem:[#allocation7 + $0x38] sm:$0xff] }
  0x6e   :  { %752 = vmatprep.subr.bf16.mxu1 %v891_v0  ;;  %730 = vmatpush3.bf16.msra.mxu0 %v729_v16  ;;  %v762_v13 = vpack.c.bf16 %v414_v12, %v413_v11  ;;  %v765_v16 = vpack.c.bf16 %v416_v15, %v415_v14 }
  0x6f   :  { %731 = vmatprep.subr.bf16.mxu0 %v891_v0 }
  0x72   :  { %733 = vmatpush3.bf16.msra.mxu0 %v732_v18  ;;  %v418_v18 = vld [vmem:[#allocation7 + $0x58] sm:$0xff] }
  0x73   :  { %734 = vmatprep.subr.bf16.mxu0 %v891_v0  ;;  %v768_v19 = vpack.c.bf16 %v418_v18, %v417_v17 }
  0x76   :  { %736 = vmatpush3.bf16.msra.mxu0 %v735_v21  ;;  %v420_v21 = vld [vmem:[#allocation7 + $0x68] sm:$0xff] }
  0x77   :  { %737 = vmatprep.subr.bf16.mxu0 %v891_v0 }
  0x7a   :  { %739 = vmatpush3.bf16.msra.mxu0 %v738_v29 }
  0x7b   :  { %740 = vmatprep.subr.bf16.mxu0 %v891_v0 }
  0x7e   :  { %742 = vmatpush3.bf16.msra.mxu0 %v741_v32 }
  0x7f   :  { %743 = vmatprep.subr.bf16.mxu0 %v891_v0 }
  0x82   :  { %745 = vmatpush3.bf16.msra.mxu0 %v744_v35 }
  0x83   :  { %746 = vmatprep.subr.bf16.mxu0 %v891_v0 }
  0x86   :  { %748 = vmatpush3.bf16.msra.mxu0 %v747_v38 }
  0x87   :  { %749 = vmatprep.subr.bf16.mxu0 %v891_v0 }
 0x13f   :  { %v180_v23 = vpop.f32.mrb[0].mxu0 }
 0x140   :  { %v181_v24 = vadd.f32 %v513_v22, %v180_v23  ;;  %v601_v25 = vpop.f32.mrb[1].mxu0  ;;  %v771_v22 = vpack.c.bf16 %v420_v21, %v419_v20  ;;  %v421_v23 = vld [vmem:[#allocation7 + $0x70] sm:$0xff] }
 0x142   :  { %v184_v26 = vmax.f32 %v181_v24, 0.0  ;;  %v422_v24 = vld [vmem:[#allocation7 + $0x78] sm:$0xff] }
 0x143   :  { %v774_v25 = vpack.c.bf16 %v422_v24, %v421_v23 }
 0x144   :  { %294 = vmatmul.mubr.f32.vlgmr.msra.gmra.mrb[0].mxu1 %v184_v26 }
 0x145   :  { %669 = vmatprep.mubr.msk.f32.mxu1 %vm892_vm0, %v893_v1  ;;  %v327_v1 = vld [vmem:[#allocation6 + $0x70] sm:$0xff]  ;;  %754 = vmatpush3.bf16.msra.mxu1 %v753_v5 }
 0x146   :  { %v750_v40 = vpack.c.bf16 %v328_v39, %v327_v1  ;;  %755 = vmatprep.subr.bf16.mxu1 %v891_v0 }
 0x148   :  { %751 = vmatpush3.bf16.msra.mxu0 %v750_v40 }
 0x149   :  { %757 = vmatpush3.bf16.msra.mxu1 %v756_v7 }
 0x14a   :  { %758 = vmatprep.subr.bf16.mxu1 %v891_v0 }
 0x14d   :  { %760 = vmatpush3.bf16.msra.mxu1 %v759_v10 }
 0x14e   :  { %761 = vmatprep.subr.bf16.mxu1 %v891_v0 }
 0x151   :  { %763 = vmatpush3.bf16.msra.mxu1 %v762_v13 }
 0x152   :  { %764 = vmatprep.subr.bf16.mxu1 %v891_v0 }
 0x155   :  { %766 = vmatpush3.bf16.msra.mxu1 %v765_v16 }
 0x156   :  { %767 = vmatprep.subr.bf16.mxu1 %v891_v0 }
 0x159   :  { %769 = vmatpush3.bf16.msra.mxu1 %v768_v19 }
 0x15a   :  { %770 = vmatprep.subr.bf16.mxu1 %v891_v0 }
 0x15d   :  { %772 = vmatpush3.bf16.msra.mxu1 %v771_v22 }
 0x15e   :  { %773 = vmatprep.subr.bf16.mxu1 %v891_v0  ;;  %v515_v0 = vld [vmem:[%s1076_s8] ss:$0 sm:$0xff] }
 0x161   :  { %775 = vmatpush3.bf16.msra.mxu1 %v774_v25 }
 0x217   :  { %v295_v46 = vpop.f32.mrb[0].mxu1 }
 0x218   :  { %v297_v47 = vpop.f32.mrb[1].mxu1  ;;  %v296_v55 = vadd.f32 %v295_v46, %v222_v52 }
 0x219   :  { %v298_v48 = vadd.f32 %v297_v47, %v226_v45 }
 0x21b   :  { %v300_v49 = vmul.f32 1.442695, %v298_v48  ;;  %v304_v57 = vsub.f32 0.0, %v298_v48 }
 0x21d   :  { %787 = vpow2.f32 %v300_v49  ;;  %v307_v61 = vsub.f32 %v304_v57, %v306_v59 }
 0x227   :  { %v788_v54 = vpop.eup %787 }
 0x228   :  { %v302_v56 = vmul.f32 %v788_v54, %v90_v51 }
 0x22a   :  { %v303_v58 = vadd.f32 %v302_v56, %v296_v55 }
 0x22c   :  { %635 = vmatmul.mubr.f32.vlgmr.msra.gmra.mrb[2].mxu0 %v303_v58  ;;  %v308_v60 = vmul.f32 0.5, %v303_v58 }
 0x22e   :  { %v309_v62 = vmul.f32 %v308_v60, %v303_v58 }
 0x230   :  { %v310_v63 = vadd.f32 %v309_v62, %v307_v61 }
 0x232   :  { %311 = vadd.xlane.f32.xlu0 %v310_v63 }
 0x2bf   :  { %v312_v26 = vpop.xlane.xlu0 %311 }
 0x2c0   :  { %501 = vst [vmem:[%s1078_s10] sm:$0xff] %v312_v26 }
 0x2ff   :  { %v402_v28 = vpop.f32.mrb[2].mxu0 }
 0x300   :  { %v403_v29 = vadd.f32 %v514_v27, %v402_v28  ;;  %v636_v30 = vpop.f32.mrb[3].mxu0 }
 0x302   :  { %v406_v31 = vmax.f32 %v403_v29, 0.0 }
 0x304   :  { %670 = vmatmul.mubr.f32.vlgmr.msra.gmra.mrb[2].mxu1 %v406_v31 }
 0x3d7   :  { %v496_v32 = vpop.f32.mrb[2].mxu1 }
 0x3d8   :  { %v497_v33 = vadd.f32 %v515_v0, %v496_v32  ;;  %v671_v34 = vpop.f32.mrb[3].mxu1 }
 0x3da   :  { %500 = vst [vmem:[%s1077_s9] sm:$0xff] %v497_v33 }
 0x3db   :  { %510 = vsyncpa [#allocation3], 1 }
 0x3dc   :  { %511 = vsyncpa [#allocation5], 1 }
 0x3dd   :  { %512 = vsyncpa [#allocation8], 1 }

</bundles_post_ra>
